<compile_context>
chip_gen: v5e
topology: v5e:2x2
jax: 0.10.0
libtpu: 0.0.40
codegen_flags: <defaults>
</compile_context>

<pallas_src>
import functools

import jax
import jax.numpy as jnp
from jax import lax
from jax.experimental import pallas as pl
from jax.experimental.pallas import tpu as pltpu

EPS = 1e-5          # PyTorch InstanceNorm2d default eps
NEG_SLOPE = 0.2


def _leaky(x):
    return jnp.where(x > 0, x, NEG_SLOPE * x)


# --------------------------------------------------------------------------
# Kernel: one batch group (nb images, rows = nb*H) per grid step.
# --------------------------------------------------------------------------
def skip_hin_kernel(x_ref, y_ref, t1s_ref, t1c_ref, t2_ref, r_ref, rows_ref,
                    out_ref, *, H):
    R, L = out_ref.shape                    # R = nb*H rows, L = W*Cout lanes
    Lin = x_ref.shape[1]                    # W*Cin
    NB = R // H

    x = x_ref[...]                          # (R, Lin)

    # Per-image vertical boundary masks for SAME padding: row r = b*H + h.
    # Shifts are sublane rolls (XLU); the wrapped boundary rows are zeroed
    # with one select each (also handles the image boundaries inside a
    # merged batch group).
    rid = lax.broadcasted_iota(jnp.int32, (R, 1), 0)
    top = rid == 0
    bot = rid == (H - 1)
    for b in range(1, NB):
        top = jnp.logical_or(top, rid == b * H)
        bot = jnp.logical_or(bot, rid == (b * H + H - 1))

    xdn = jnp.where(top, 0.0, pltpu.roll(x, shift=1, axis=0))       # row h -> x[h-1]
    xup = jnp.where(bot, 0.0, pltpu.roll(x, shift=R - 1, axis=0))   # row h -> x[h+1]

    # ---- conv_1 (3x3 SAME) + identity 1x1: two lane-dense matmuls ----
    z_side = jnp.dot(jnp.concatenate([xdn, xup], axis=1), t1s_ref[...],
                     preferred_element_type=jnp.float32)            # (R, L)
    z_ctr = jnp.dot(x, t1c_ref[...],
                    preferred_element_type=jnp.float32)             # (R, 2L)

    conv1 = z_ctr[:, :L] + z_side + rows_ref[0:1, :]                # + b1
    ident = z_ctr[:, L:] + rows_ref[1:2, :]                         # + bid

    # ---- InstanceNorm (first half channels) + passthrough blend, fused into
    #      one per-lane affine.  One-pass stats per image; the tiny matmul
    #      with rmat (pre-scaled by 1/(H*W)) reduces over W and re-tiles the
    #      per-channel stats across the lanes in one shot. ----
    cbs = [conv1[b * H:(b + 1) * H, :] for b in range(NB)]
    csum = [jnp.sum(cb, axis=0, keepdims=True) for cb in cbs]       # (1, L) each
    csq = [jnp.sum(cb * cb, axis=0, keepdims=True) for cb in cbs]
    stats = jnp.dot(jnp.concatenate(csum + csq, axis=0), r_ref[...],
                    preferred_element_type=jnp.float32)             # (2*NB, L)
    mean = stats[:NB, :]                                            # E[x]
    ex2 = stats[NB:, :]                                             # E[x^2]
    rstd = lax.rsqrt(jnp.maximum(ex2 - mean * mean, 0.0) + EPS)     # (NB, L)
    gs = rows_ref[3:4, :] * rstd                                    # m*gamma*rstd
    scale = gs + rows_ref[5:6, :]                                   # + (1 - m)
    bias = rows_ref[4:5, :] - mean * gs                             # m*beta - mean*...

    act = jnp.concatenate(
        [_leaky(cbs[b] * scale[b:b + 1, :] + bias[b:b + 1, :]) for b in range(NB)],
        axis=0)                                                     # (R, L)

    # ---- conv_2 (3x3 SAME), all dy taps K-stacked into one matmul ----
    adn = jnp.where(top, 0.0, pltpu.roll(act, shift=1, axis=0))
    aup = jnp.where(bot, 0.0, pltpu.roll(act, shift=R - 1, axis=0))
    c2 = jnp.dot(jnp.concatenate([adn, act, aup], axis=1), t2_ref[...],
                 preferred_element_type=jnp.float32)                # (R, L)
    conv2 = _leaky(c2 + rows_ref[2:3, :])                           # + b2

    hin = conv2 + ident

    # ---- skip: alpha1 * body(x) + alpha2 * y (alphas lane-tiled rows) ----
    out = rows_ref[6:7, :] * hin + rows_ref[7:8, :] * y_ref[...]
    out_ref[...] = out.astype(out_ref.dtype)


# --------------------------------------------------------------------------
# Wrapper
# --------------------------------------------------------------------------
def _row_toeplitz(w, W):
    """w: (3, 3, Ci, Co) HWIO -> (3, W*Ci, W*Co) per-dy block-Toeplitz matrices
    encoding the horizontal (dx) taps with SAME (pad=1) boundary handling."""
    kh, kw, _, _ = w.shape
    mats = []
    for dy in range(kh):
        t = None
        for dx in range(kw):
            shift = jnp.eye(W, W, k=1 - dx, dtype=w.dtype)   # win = wout + dx - 1
            blk = jnp.kron(shift, w[dy, dx])
            t = blk if t is None else t + blk
        mats.append(t)
    return jnp.stack(mats)                                    # (3, W*Ci, W*Co)


def _pick_batch_block(n, h):
    """Batch elements per grid step: v7x has 2 TensorCores -> keep >= 2
    'parallel' grid steps; single-TC chips (v5e/v6e) merge the whole batch
    into one step so the MXU M dimension is n*H and per-step overhead is
    amortized."""
    try:
        kind = jax.devices()[0].device_kind.lower()
    except Exception:
        kind = ""
    if "v7" in kind and n >= 2:
        nb = n // 2 if n % 2 == 0 else 1
    else:
        nb = n
    if nb != n and (nb * h) % 8 != 0:     # keep the (8,128) BlockSpec rule happy
        nb = n
    return nb


def skip_hin_pallas(x, y, params, *, batch_block=None):
    """x: (N, H, W, Cin) f32; y: (N, H, W, Cout) f32 -> (N, H, W, Cout) f32."""
    N, H, W, Cin = x.shape
    Cout = params["w2"].shape[-1]
    assert Cout % 2 == 0, "HinBlock requires an even number of output channels"
    Ch = Cout // 2
    Lin = W * Cin
    L = W * Cout
    # NOTE: best performance when Lin and L are multiples of 128 (lane-dense);
    # other shapes still run correctly (blocks cover the full lane extent).

    nb = _pick_batch_block(N, H) if batch_block is None else batch_block
    assert N % nb == 0

    f32 = jnp.float32
    # conv_1 Toeplitz: off-centre dy taps K-stacked; centre tap carries the
    # identity-1x1 conv as extra output columns.
    t1 = _row_toeplitz(params["w1"].astype(f32), W)           # (3, Lin, L)
    t1_side = jnp.concatenate([t1[0], t1[2]], axis=0)         # (2*Lin, L)
    tid = jnp.kron(jnp.eye(W, dtype=f32), params["wid"].astype(f32))  # (Lin, L)
    t1_ctr = jnp.concatenate([t1[1], tid], axis=1)            # (Lin, 2L)

    # conv_2 Toeplitz, all three dy taps K-stacked along K.
    t2_stk = _row_toeplitz(params["w2"].astype(f32), W).reshape(3 * L, L)

    # Stats reduce/re-tile matrix, pre-scaled by 1/(H*W): one matmul turns
    # per-lane (w,c) column sums into per-channel means tiled across lanes.
    rmat = jnp.kron(jnp.ones((W, W), f32), jnp.eye(Cout, dtype=f32)) / float(H * W)

    def tile_c(v):
        return jnp.tile(v.astype(f32), W)                     # (L,), [w*C + c] = v[c]

    gm = jnp.concatenate([params["gamma"].astype(f32),
                          jnp.zeros((Cout - Ch,), f32)])      # mask * gamma
    mb = jnp.concatenate([params["beta"].astype(f32),
                          jnp.zeros((Cout - Ch,), f32)])      # mask * beta
    inv_m = jnp.concatenate([jnp.zeros((Ch,), f32),
                             jnp.ones((Cout - Ch,), f32)])    # 1 - mask
    rows = jnp.stack([
        tile_c(params["b1"]),      # 0: conv_1 bias
        tile_c(params["bid"]),     # 1: identity bias
        tile_c(params["b2"]),      # 2: conv_2 bias
        tile_c(gm),                # 3
        tile_c(mb),                # 4
        tile_c(inv_m),             # 5
        jnp.tile(params["alpha1"].astype(f32), L),            # 6
        jnp.tile(params["alpha2"].astype(f32), L),            # 7
    ])                                                        # (8, L)

    # Lane-dense 2D views: rows = image rows stacked over the batch.
    x2 = x.astype(f32).reshape(N * H, Lin)
    y2 = y.astype(f32).reshape(N * H, L)

    grid_spec = pltpu.PrefetchScalarGridSpec(
        num_scalar_prefetch=0,
        grid=(N // nb,),
        in_specs=[
            pl.BlockSpec((nb * H, Lin), lambda i: (i, 0)),        # x rows
            pl.BlockSpec((nb * H, L), lambda i: (i, 0)),          # y rows
            pl.BlockSpec((2 * Lin, L), lambda i: (0, 0)),         # t1 side taps (resident)
            pl.BlockSpec((Lin, 2 * L), lambda i: (0, 0)),         # t1 centre + identity
            pl.BlockSpec((3 * L, L), lambda i: (0, 0)),           # t2 (resident)
            pl.BlockSpec((L, L), lambda i: (0, 0)),               # rmat (resident)
            pl.BlockSpec((8, L), lambda i: (0, 0)),               # packed params
        ],
        out_specs=pl.BlockSpec((nb * H, L), lambda i: (i, 0)),
    )

    out2 = pl.pallas_call(
        functools.partial(skip_hin_kernel, H=H),
        out_shape=jax.ShapeDtypeStruct((N * H, L), f32),
        grid_spec=grid_spec,
        compiler_params=pltpu.CompilerParams(
            dimension_semantics=("parallel",)),
    )(x2, y2, t1_side, t1_ctr, t2_stk, rmat, rows)

    return out2.reshape(N, H, W, Cout)


# ---------------- pure-JAX reference (for validation only) ----------------
def skip_hin_ref(x, y, params):
    Cout = params["w2"].shape[-1]
    Ch = Cout // 2
    dn = ("NHWC", "HWIO", "NHWC")

    conv1 = lax.conv_general_dilated(x, params["w1"], (1, 1), "SAME",
                                     dimension_numbers=dn)
    conv1 = conv1 + params["b1"].reshape(1, 1, 1, Cout)
    out1, out2 = conv1[..., :Ch], conv1[..., Ch:]
    mean = jnp.mean(out1, axis=(1, 2), keepdims=True)
    var = jnp.mean((out1 - mean) ** 2, axis=(1, 2), keepdims=True)
    out1n = (out1 - mean) / jnp.sqrt(var + EPS)
    out1n = out1n * params["gamma"].reshape(1, 1, 1, Ch) \
        + params["beta"].reshape(1, 1, 1, Ch)
    act = _leaky(jnp.concatenate([out1n, out2], axis=-1))

    conv2 = lax.conv_general_dilated(act, params["w2"], (1, 1), "SAME",
                                     dimension_numbers=dn)
    conv2 = _leaky(conv2 + params["b2"].reshape(1, 1, 1, Cout))

    ident = jnp.einsum("nhwc,co->nhwo", x, params["wid"]) \
        + params["bid"].reshape(1, 1, 1, Cout)

    hin = conv2 + ident
    return params["alpha1"][0] * hin + params["alpha2"][0] * y


def make_params(key, cin, cout):
    ks = jax.random.split(key, 8)
    s = 0.1
    return {
        "w1": s * jax.random.normal(ks[0], (3, 3, cin, cout), jnp.float32),
        "b1": s * jax.random.normal(ks[1], (cout,), jnp.float32),
        "gamma": 1.0 + s * jax.random.normal(ks[2], (cout // 2,), jnp.float32),
        "beta": s * jax.random.normal(ks[3], (cout // 2,), jnp.float32),
        "w2": s * jax.random.normal(ks[4], (3, 3, cout, cout), jnp.float32),
        "b2": s * jax.random.normal(ks[5], (cout,), jnp.float32),
        "wid": s * jax.random.normal(ks[6], (cin, cout), jnp.float32),
        "bid": s * jax.random.normal(ks[7], (cout,), jnp.float32),
        # skip.__init__: alpha1 = 1.0, alpha2 = 0.5
        "alpha1": jnp.array([1.0], jnp.float32),
        "alpha2": jnp.array([0.5], jnp.float32),
    }


if __name__ == "__main__":
    N, H, W, CIN, COUT = 2, 16, 16, 8, 8

    key = jax.random.PRNGKey(0)
    kx, ky, kp = jax.random.split(key, 3)
    x = jax.random.normal(kx, (N, H, W, CIN), jnp.float32)
    y = jax.random.normal(ky, (N, H, W, COUT), jnp.float32)
    params = make_params(kp, CIN, COUT)

    out = jax.block_until_ready(skip_hin_pallas(x, y, params))
    ref = jax.block_until_ready(skip_hin_ref(x, y, params))

    assert out.shape == (N, H, W, COUT)
    assert jnp.allclose(out, ref, rtol=1e-4, atol=1e-4), \
        f"max abs err {jnp.max(jnp.abs(out - ref))}"
    print("KERNEL_OK")
</pallas_src>

<mosaic_0001>
module attributes {stable_mosaic.version = 11 : i64} {
  func.func @skip_hin_kernel(%arg0: i32, %arg1: memref<32x128xf32, #tpu.memory_space<vmem>>, %arg2: memref<32x128xf32, #tpu.memory_space<vmem>>, %arg3: memref<256x128xf32, #tpu.memory_space<vmem>>, %arg4: memref<128x256xf32, #tpu.memory_space<vmem>>, %arg5: memref<384x128xf32, #tpu.memory_space<vmem>>, %arg6: memref<128x128xf32, #tpu.memory_space<vmem>>, %arg7: memref<8x128xf32, #tpu.memory_space<vmem>>, %arg8: memref<32x128xf32, #tpu.memory_space<vmem>>) attributes {dimension_semantics = [#tpu.dimension_semantics<parallel>], iteration_bounds = array<i64: 1>, scalar_prefetch = 0 : i64, scratch_operands = 0 : i64, tpu.core_type = #tpu.core_type<tc>, window_params = [{transform_indices = @transform_0, window_bounds = array<i64: 32, 128>}, {transform_indices = @transform_1, window_bounds = array<i64: 32, 128>}, {pipeline_mode = #tpu.pipeline_mode<synchronous>, transform_indices = @transform_2, window_bounds = array<i64: 256, 128>}, {pipeline_mode = #tpu.pipeline_mode<synchronous>, transform_indices = @transform_3, window_bounds = array<i64: 128, 256>}, {pipeline_mode = #tpu.pipeline_mode<synchronous>, transform_indices = @transform_4, window_bounds = array<i64: 384, 128>}, {pipeline_mode = #tpu.pipeline_mode<synchronous>, transform_indices = @transform_5, window_bounds = array<i64: 128, 128>}, {pipeline_mode = #tpu.pipeline_mode<synchronous>, transform_indices = @transform_6, window_bounds = array<i64: 8, 128>}, {transform_indices = @transform_7, window_bounds = array<i64: 32, 128>}]} {
    %c0 = arith.constant 0 : index
    %c0_0 = arith.constant 0 : index
    %0 = vector.load %arg1[%c0, %c0_0] : memref<32x128xf32, #tpu.memory_space<vmem>>, vector<32x128xf32>
    %1 = tpu.iota {dimensions = array<i32: 0>} : vector<32x1xi32>
    %c0_i32 = arith.constant 0 : i32
    %2 = vector.broadcast %c0_i32 : i32 to vector<32x1xi32>
    %3 = arith.cmpi eq, %1, %2 : vector<32x1xi32>
    %c15_i32 = arith.constant 15 : i32
    %4 = vector.broadcast %c15_i32 : i32 to vector<32x1xi32>
    %5 = arith.cmpi eq, %1, %4 : vector<32x1xi32>
    %c16_i32 = arith.constant 16 : i32
    %6 = vector.broadcast %c16_i32 : i32 to vector<32x1xi32>
    %7 = arith.cmpi eq, %1, %6 : vector<32x1xi32>
    %8 = arith.ori %3, %7 : vector<32x1xi1>
    %c31_i32 = arith.constant 31 : i32
    %9 = vector.broadcast %c31_i32 : i32 to vector<32x1xi32>
    %10 = arith.cmpi eq, %1, %9 : vector<32x1xi32>
    %11 = arith.ori %5, %10 : vector<32x1xi1>
    %c1_i32 = arith.constant 1 : i32
    %12 = tpu.dynamic_rotate %0 by %c1_i32 dim 0 : vector<32x128xf32>, i32 -> vector<32x128xf32>
    %cst = arith.constant 0.000000e+00 : f32
    %13 = vector.shape_cast %8 : vector<32x1xi1> to vector<32x1xi1>
    %14 = vector.broadcast %13 : vector<32x1xi1> to vector<32x128xi1>
    %15 = vector.broadcast %cst : f32 to vector<32x128xf32>
    %16 = arith.select %14, %15, %12 : vector<32x128xi1>, vector<32x128xf32>
    %c31_i32_1 = arith.constant 31 : i32
    %17 = tpu.dynamic_rotate %0 by %c31_i32_1 dim 0 : vector<32x128xf32>, i32 -> vector<32x128xf32>
    %cst_2 = arith.constant 0.000000e+00 : f32
    %18 = vector.shape_cast %11 : vector<32x1xi1> to vector<32x1xi1>
    %19 = vector.broadcast %18 : vector<32x1xi1> to vector<32x128xi1>
    %20 = vector.broadcast %cst_2 : f32 to vector<32x128xf32>
    %21 = arith.select %19, %20, %17 : vector<32x128xi1>, vector<32x128xf32>
    %22 = tpu.concatenate %16, %21 in 1 : vector<32x128xf32>, vector<32x128xf32> -> vector<32x256xf32>
    %c0_3 = arith.constant 0 : index
    %c0_4 = arith.constant 0 : index
    %23 = vector.load %arg3[%c0_3, %c0_4] : memref<256x128xf32, #tpu.memory_space<vmem>>, vector<256x128xf32>
    %cst_5 = arith.constant dense<0.000000e+00> : vector<32x128xf32>
    %24 = tpu.matmul %22, %23, %cst_5 {dimension_numbers = #tpu.dot_dimension_numbers<[1], [0], [0], [1], [0, 0, 1, 1], [], []>} : vector<32x256xf32>, vector<256x128xf32>, vector<32x128xf32> -> vector<32x128xf32>
    %c0_6 = arith.constant 0 : index
    %c0_7 = arith.constant 0 : index
    %25 = vector.load %arg4[%c0_6, %c0_7] : memref<128x256xf32, #tpu.memory_space<vmem>>, vector<128x256xf32>
    %cst_8 = arith.constant dense<0.000000e+00> : vector<32x256xf32>
    %26 = tpu.matmul %0, %25, %cst_8 {dimension_numbers = #tpu.dot_dimension_numbers<[1], [0], [0], [1], [0, 0, 1, 1], [], []>} : vector<32x128xf32>, vector<128x256xf32>, vector<32x256xf32> -> vector<32x256xf32>
    %27 = vector.extract_strided_slice %26 {offsets = [0, 0], sizes = [32, 128], strides = [1, 1]} : vector<32x256xf32> to vector<32x128xf32>
    %28 = arith.addf %27, %24 : vector<32x128xf32>
    %c0_9 = arith.constant 0 : index
    %c0_10 = arith.constant 0 : index
    %29 = vector.load %arg7[%c0_9, %c0_10] : memref<8x128xf32, #tpu.memory_space<vmem>>, vector<1x128xf32>
    %30 = vector.broadcast %29 : vector<1x128xf32> to vector<32x128xf32>
    %31 = arith.addf %28, %30 : vector<32x128xf32>
    %32 = vector.extract_strided_slice %26 {offsets = [0, 128], sizes = [32, 128], strides = [1, 1]} : vector<32x256xf32> to vector<32x128xf32>
    %c1 = arith.constant 1 : index
    %c0_11 = arith.constant 0 : index
    %33 = vector.load %arg7[%c1, %c0_11] : memref<8x128xf32, #tpu.memory_space<vmem>>, vector<1x128xf32>
    %34 = vector.broadcast %33 : vector<1x128xf32> to vector<32x128xf32>
    %35 = arith.addf %32, %34 : vector<32x128xf32>
    %36 = vector.extract_strided_slice %31 {offsets = [0, 0], sizes = [16, 128], strides = [1, 1]} : vector<32x128xf32> to vector<16x128xf32>
    %37 = vector.extract_strided_slice %31 {offsets = [16, 0], sizes = [16, 128], strides = [1, 1]} : vector<32x128xf32> to vector<16x128xf32>
    %cst_12 = arith.constant dense<0.000000e+00> : vector<128xf32>
    %38 = vector.multi_reduction <add>, %36, %cst_12 [0] : vector<16x128xf32> to vector<128xf32>
    %39 = vector.shape_cast %38 : vector<128xf32> to vector<1x128xf32>
    %cst_13 = arith.constant dense<0.000000e+00> : vector<128xf32>
    %40 = vector.multi_reduction <add>, %37, %cst_13 [0] : vector<16x128xf32> to vector<128xf32>
    %41 = vector.shape_cast %40 : vector<128xf32> to vector<1x128xf32>
    %42 = arith.mulf %36, %36 : vector<16x128xf32>
    %cst_14 = arith.constant dense<0.000000e+00> : vector<128xf32>
    %43 = vector.multi_reduction <add>, %42, %cst_14 [0] : vector<16x128xf32> to vector<128xf32>
    %44 = vector.shape_cast %43 : vector<128xf32> to vector<1x128xf32>
    %45 = arith.mulf %37, %37 : vector<16x128xf32>
    %cst_15 = arith.constant dense<0.000000e+00> : vector<128xf32>
    %46 = vector.multi_reduction <add>, %45, %cst_15 [0] : vector<16x128xf32> to vector<128xf32>
    %47 = vector.shape_cast %46 : vector<128xf32> to vector<1x128xf32>
    %48 = tpu.concatenate %39, %41, %44, %47 in 0 : vector<1x128xf32>, vector<1x128xf32>, vector<1x128xf32>, vector<1x128xf32> -> vector<4x128xf32>
    %c0_16 = arith.constant 0 : index
    %c0_17 = arith.constant 0 : index
    %49 = vector.load %arg6[%c0_16, %c0_17] : memref<128x128xf32, #tpu.memory_space<vmem>>, vector<128x128xf32>
    %cst_18 = arith.constant dense<0.000000e+00> : vector<4x128xf32>
    %50 = tpu.matmul %48, %49, %cst_18 {dimension_numbers = #tpu.dot_dimension_numbers<[1], [0], [0], [1], [0, 0, 1, 1], [], []>} : vector<4x128xf32>, vector<128x128xf32>, vector<4x128xf32> -> vector<4x128xf32>
    %51 = vector.extract_strided_slice %50 {offsets = [0, 0], sizes = [2, 128], strides = [1, 1]} : vector<4x128xf32> to vector<2x128xf32>
    %52 = vector.extract_strided_slice %50 {offsets = [2, 0], sizes = [2, 128], strides = [1, 1]} : vector<4x128xf32> to vector<2x128xf32>
    %53 = arith.mulf %51, %51 : vector<2x128xf32>
    %54 = arith.subf %52, %53 : vector<2x128xf32>
    %cst_19 = arith.constant 0.000000e+00 : f32
    %55 = vector.broadcast %cst_19 : f32 to vector<2x128xf32>
    %56 = arith.maximumf %54, %55 : vector<2x128xf32>
    %cst_20 = arith.constant 9.99999974E-6 : f32
    %57 = vector.broadcast %cst_20 : f32 to vector<2x128xf32>
    %58 = arith.addf %56, %57 : vector<2x128xf32>
    %59 = math.rsqrt %58 : vector<2x128xf32>
    %c3 = arith.constant 3 : index
    %c0_21 = arith.constant 0 : index
    %60 = vector.load %arg7[%c3, %c0_21] : memref<8x128xf32, #tpu.memory_space<vmem>>, vector<1x128xf32>
    %61 = vector.broadcast %60 : vector<1x128xf32> to vector<2x128xf32>
    %62 = arith.mulf %61, %59 : vector<2x128xf32>
    %c5 = arith.constant 5 : index
    %c0_22 = arith.constant 0 : index
    %63 = vector.load %arg7[%c5, %c0_22] : memref<8x128xf32, #tpu.memory_space<vmem>>, vector<1x128xf32>
    %64 = vector.broadcast %63 : vector<1x128xf32> to vector<2x128xf32>
    %65 = arith.addf %62, %64 : vector<2x128xf32>
    %c4 = arith.constant 4 : index
    %c0_23 = arith.constant 0 : index
    %66 = vector.load %arg7[%c4, %c0_23] : memref<8x128xf32, #tpu.memory_space<vmem>>, vector<1x128xf32>
    %67 = arith.mulf %51, %62 : vector<2x128xf32>
    %68 = vector.broadcast %66 : vector<1x128xf32> to vector<2x128xf32>
    %69 = arith.subf %68, %67 : vector<2x128xf32>
    %70 = vector.extract_strided_slice %65 {offsets = [0, 0], sizes = [1, 128], strides = [1, 1]} : vector<2x128xf32> to vector<1x128xf32>
    %71 = vector.broadcast %70 : vector<1x128xf32> to vector<16x128xf32>
    %72 = arith.mulf %36, %71 : vector<16x128xf32>
    %73 = vector.extract_strided_slice %69 {offsets = [0, 0], sizes = [1, 128], strides = [1, 1]} : vector<2x128xf32> to vector<1x128xf32>
    %74 = vector.broadcast %73 : vector<1x128xf32> to vector<16x128xf32>
    %75 = arith.addf %72, %74 : vector<16x128xf32>
    %cst_24 = arith.constant 0.000000e+00 : f32
    %76 = vector.broadcast %cst_24 : f32 to vector<16x128xf32>
    %77 = arith.cmpf ogt, %75, %76 : vector<16x128xf32>
    %cst_25 = arith.constant 2.000000e-01 : f32
    %78 = vector.broadcast %cst_25 : f32 to vector<16x128xf32>
    %79 = arith.mulf %78, %75 : vector<16x128xf32>
    %80 = arith.select %77, %75, %79 : vector<16x128xi1>, vector<16x128xf32>
    %81 = vector.extract_strided_slice %65 {offsets = [1, 0], sizes = [1, 128], strides = [1, 1]} : vector<2x128xf32> to vector<1x128xf32>
    %82 = vector.broadcast %81 : vector<1x128xf32> to vector<16x128xf32>
    %83 = arith.mulf %37, %82 : vector<16x128xf32>
    %84 = vector.extract_strided_slice %69 {offsets = [1, 0], sizes = [1, 128], strides = [1, 1]} : vector<2x128xf32> to vector<1x128xf32>
    %85 = vector.broadcast %84 : vector<1x128xf32> to vector<16x128xf32>
    %86 = arith.addf %83, %85 : vector<16x128xf32>
    %cst_26 = arith.constant 0.000000e+00 : f32
    %87 = vector.broadcast %cst_26 : f32 to vector<16x128xf32>
    %88 = arith.cmpf ogt, %86, %87 : vector<16x128xf32>
    %cst_27 = arith.constant 2.000000e-01 : f32
    %89 = vector.broadcast %cst_27 : f32 to vector<16x128xf32>
    %90 = arith.mulf %89, %86 : vector<16x128xf32>
    %91 = arith.select %88, %86, %90 : vector<16x128xi1>, vector<16x128xf32>
    %92 = tpu.concatenate %80, %91 in 0 : vector<16x128xf32>, vector<16x128xf32> -> vector<32x128xf32>
    %c1_i32_28 = arith.constant 1 : i32
    %93 = tpu.dynamic_rotate %92 by %c1_i32_28 dim 0 : vector<32x128xf32>, i32 -> vector<32x128xf32>
    %cst_29 = arith.constant 0.000000e+00 : f32
    %94 = vector.shape_cast %8 : vector<32x1xi1> to vector<32x1xi1>
    %95 = vector.broadcast %94 : vector<32x1xi1> to vector<32x128xi1>
    %96 = vector.broadcast %cst_29 : f32 to vector<32x128xf32>
    %97 = arith.select %95, %96, %93 : vector<32x128xi1>, vector<32x128xf32>
    %c31_i32_30 = arith.constant 31 : i32
    %98 = tpu.dynamic_rotate %92 by %c31_i32_30 dim 0 : vector<32x128xf32>, i32 -> vector<32x128xf32>
    %cst_31 = arith.constant 0.000000e+00 : f32
    %99 = vector.shape_cast %11 : vector<32x1xi1> to vector<32x1xi1>
    %100 = vector.broadcast %99 : vector<32x1xi1> to vector<32x128xi1>
    %101 = vector.broadcast %cst_31 : f32 to vector<32x128xf32>
    %102 = arith.select %100, %101, %98 : vector<32x128xi1>, vector<32x128xf32>
    %103 = tpu.concatenate %97, %92, %102 in 1 : vector<32x128xf32>, vector<32x128xf32>, vector<32x128xf32> -> vector<32x384xf32>
    %c0_32 = arith.constant 0 : index
    %c0_33 = arith.constant 0 : index
    %104 = vector.load %arg5[%c0_32, %c0_33] : memref<384x128xf32, #tpu.memory_space<vmem>>, vector<384x128xf32>
    %cst_34 = arith.constant dense<0.000000e+00> : vector<32x128xf32>
    %105 = tpu.matmul %103, %104, %cst_34 {dimension_numbers = #tpu.dot_dimension_numbers<[1], [0], [0], [1], [0, 0, 1, 1], [], []>} : vector<32x384xf32>, vector<384x128xf32>, vector<32x128xf32> -> vector<32x128xf32>
    %c2 = arith.constant 2 : index
    %c0_35 = arith.constant 0 : index
    %106 = vector.load %arg7[%c2, %c0_35] : memref<8x128xf32, #tpu.memory_space<vmem>>, vector<1x128xf32>
    %107 = vector.broadcast %106 : vector<1x128xf32> to vector<32x128xf32>
    %108 = arith.addf %105, %107 : vector<32x128xf32>
    %cst_36 = arith.constant 0.000000e+00 : f32
    %109 = vector.broadcast %cst_36 : f32 to vector<32x128xf32>
    %110 = arith.cmpf ogt, %108, %109 : vector<32x128xf32>
    %cst_37 = arith.constant 2.000000e-01 : f32
    %111 = vector.broadcast %cst_37 : f32 to vector<32x128xf32>
    %112 = arith.mulf %111, %108 : vector<32x128xf32>
    %113 = arith.select %110, %108, %112 : vector<32x128xi1>, vector<32x128xf32>
    %114 = arith.addf %113, %35 : vector<32x128xf32>
    %c6 = arith.constant 6 : index
    %c0_38 = arith.constant 0 : index
    %115 = vector.load %arg7[%c6, %c0_38] : memref<8x128xf32, #tpu.memory_space<vmem>>, vector<1x128xf32>
    %116 = vector.broadcast %115 : vector<1x128xf32> to vector<32x128xf32>
    %117 = arith.mulf %116, %114 : vector<32x128xf32>
    %c7 = arith.constant 7 : index
    %c0_39 = arith.constant 0 : index
    %118 = vector.load %arg7[%c7, %c0_39] : memref<8x128xf32, #tpu.memory_space<vmem>>, vector<1x128xf32>
    %c0_40 = arith.constant 0 : index
    %c0_41 = arith.constant 0 : index
    %119 = vector.load %arg2[%c0_40, %c0_41] : memref<32x128xf32, #tpu.memory_space<vmem>>, vector<32x128xf32>
    %120 = vector.broadcast %118 : vector<1x128xf32> to vector<32x128xf32>
    %121 = arith.mulf %120, %119 : vector<32x128xf32>
    %122 = arith.addf %117, %121 : vector<32x128xf32>
    %c0_42 = arith.constant 0 : index
    %c0_43 = arith.constant 0 : index
    %123 = vector.load %arg8[%c0_42, %c0_43] : memref<32x128xf32, #tpu.memory_space<vmem>>, vector<32x128xf32>
    tpu.vector_store %arg8[%c0_42, %c0_43], %122 {strides = array<i32>} : memref<32x128xf32, #tpu.memory_space<vmem>>, vector<32x128xf32>,
    return
  }
  func.func @transform_0(%arg0: i32) -> (i32, i32) {
    %c0_i32 = arith.constant 0 : i32
    %c0_i32_0 = arith.constant 0 : i32
    return %arg0, %c0_i32 : i32, i32
  }
  func.func @transform_1(%arg0: i32) -> (i32, i32) {
    %c0_i32 = arith.constant 0 : i32
    %c0_i32_0 = arith.constant 0 : i32
    return %arg0, %c0_i32 : i32, i32
  }
  func.func @transform_2(%arg0: i32) -> (i32, i32) {
    %c0_i32 = arith.constant 0 : i32
    %c0_i32_0 = arith.constant 0 : i32
    %c0_i32_1 = arith.constant 0 : i32
    return %c0_i32, %c0_i32_0 : i32, i32
  }
  func.func @transform_3(%arg0: i32) -> (i32, i32) {
    %c0_i32 = arith.constant 0 : i32
    %c0_i32_0 = arith.constant 0 : i32
    %c0_i32_1 = arith.constant 0 : i32
    return %c0_i32, %c0_i32_0 : i32, i32
  }
  func.func @transform_4(%arg0: i32) -> (i32, i32) {
    %c0_i32 = arith.constant 0 : i32
    %c0_i32_0 = arith.constant 0 : i32
    %c0_i32_1 = arith.constant 0 : i32
    return %c0_i32, %c0_i32_0 : i32, i32
  }
  func.func @transform_5(%arg0: i32) -> (i32, i32) {
    %c0_i32 = arith.constant 0 : i32
    %c0_i32_0 = arith.constant 0 : i32
    %c0_i32_1 = arith.constant 0 : i32
    return %c0_i32, %c0_i32_0 : i32, i32
  }
  func.func @transform_6(%arg0: i32) -> (i32, i32) {
    %c0_i32 = arith.constant 0 : i32
    %c0_i32_0 = arith.constant 0 : i32
    %c0_i32_1 = arith.constant 0 : i32
    return %c0_i32, %c0_i32_0 : i32, i32
  }
  func.func @transform_7(%arg0: i32) -> (i32, i32) {
    %c0_i32 = arith.constant 0 : i32
    %c0_i32_0 = arith.constant 0 : i32
    return %arg0, %c0_i32 : i32, i32
  }
}

</mosaic_0001>

<bundles_post_ra>
// kernel: tpu_custom_call.1
= control target key start
LH: loop header
LB: loop body
LE: loop exit
PB: predicated region body
PF: predicated region fallthrough
CT: control target
= control target key end

     0   :  { %12 = vsyncpa [#allocation3], 0  ;;  %s1213_s0 = inlined_call_operand.hbm [shape: f32[32,128], index: 0, kind: input, shape index: {}]   ;;  %s1214_s1 = inlined_call_operand.hbm [shape: f32[32,128], index: 1, kind: input, shape index: {}]   ;;  %s1215_s2 = inlined_call_operand.hbm [shape: f32[256,128], index: 2, kind: input, shape index: {}]   ;;  %s1216_s3 = inlined_call_operand.hbm [shape: f32[128,256], index: 3, kind: input, shape index: {}]   ;;  %s1217_s4 = inlined_call_operand.hbm [shape: f32[384,128], index: 4, kind: input, shape index: {}]   ;;  %s1218_s5 = inlined_call_operand.hbm [shape: f32[128,128], index: 5, kind: input, shape index: {}]   ;;  %s1219_s6 = inlined_call_operand.hbm [shape: f32[8,128], index: 6, kind: input, shape index: {}]   ;;  %s1220_s7 = inlined_call_operand.hbm [shape: f32[32,128], index: 7, kind: output, shape index: {}]  }
   0x1   :  { %13 = vsyncpa [#allocation6], 0 }
   0x2   :  { %14 = vsyncpa [#allocation9], 0 }
   0x3   :  { %15 = vsyncpa [#allocation12], 0 }
   0x4   :  { %16 = vsyncpa [#allocation4], 0  ;;  %s34_s26 = sshll.u32 %s1214_s1, 4  ;;  %s1000_s27 = smov [#allocation5]   ;;  %s35_s26 = int_to_ptr.hbm [resolvable:$true] %s34_s26 }
   0x5   :  { %s36_s28 = sshll.u32 %s1000_s27, 4  ;;  %s60_s8 = sshll.u32 %s1216_s3, 4  ;;  %s37_s28 = int_to_ptr.vmem [resolvable:$true] %s36_s28  ;;  %s61_s8 = int_to_ptr.hbm [resolvable:$true] %s60_s8 }
   0x6   :  { %s1001_s9 = smov 128   ;;  %s1002_s10 = smov 8  }
   0x7   :  { %42 = dma.hbm_to_vmem [thread:$0]  %s35_s26, 512, %s37_s28, [#allocation6], %s1001_s9, %s1001_s9, %s1002_s10  }
   0x8   :  { %s1003_s11 = smov [#allocation8]   ;;  %s1004_s13 = smov 256  }
   0x9   :  { %s62_s12 = sshll.u32 %s1003_s11, 4  ;;  %s1005_s1 = smov 16   ;;  %s63_s12 = int_to_ptr.vmem [resolvable:$true] %s62_s12 }
   0xa   :  { %68 = dma.hbm_to_vmem [thread:$0]  %s61_s8, 4096, %s63_s12, [#allocation9], %s1004_s13, %s1004_s13, %s1005_s1  }
   0xb   :  { %s86_s16 = sshll.u32 %s1218_s5, 4  ;;  %s1006_s17 = smov [#allocation11]   ;;  %s87_s16 = int_to_ptr.hbm [resolvable:$true] %s86_s16 }
   0xc   :  { %s88_s3 = sshll.u32 %s1006_s17, 4  ;;  %s21_s20 = sshll.u32 %s1213_s0, 4  ;;  %s89_s3 = int_to_ptr.vmem [resolvable:$true] %s88_s3  ;;  %s22_s20 = int_to_ptr.hbm [resolvable:$true] %s21_s20 }
   0xd   :  { %94 = dma.hbm_to_vmem [thread:$0]  %s87_s16, 2048, %s89_s3, [#allocation12], %s1001_s9, %s1001_s9, %s1002_s10  }
   0xe   :  { %s1007_s21 = smov [#allocation2]   ;;  %s47_s25 = sshll.u32 %s1215_s2, 4  ;;  %s48_s25 = int_to_ptr.hbm [resolvable:$true] %s47_s25 }
   0xf   :  { %s23_s22 = sshll.u32 %s1007_s21, 4  ;;  %s73_s0 = sshll.u32 %s1217_s4, 4  ;;  %s24_s22 = int_to_ptr.vmem [resolvable:$true] %s23_s22  ;;  %s74_s0 = int_to_ptr.hbm [resolvable:$true] %s73_s0 }
  0x10   :  { %29 = dma.hbm_to_vmem [thread:$0]  %s22_s20, 512, %s24_s22, [#allocation3], %s1001_s9, %s1001_s9, %s1002_s10  }
  0x11   :  { %s1008_s27 = smov [#allocation7]   ;;  %s1009_s29 = smov [#allocation10]  }
  0x12   :  { %s49_s28 = sshll.u32 %s1008_s27, 4  ;;  %s75_s2 = sshll.u32 %s1009_s29, 4  ;;  %s50_s28 = int_to_ptr.vmem [resolvable:$true] %s49_s28  ;;  %s76_s2 = int_to_ptr.vmem [resolvable:$true] %s75_s2 }
  0x13   :  { %55 = dma.hbm_to_vmem [thread:$0]  %s48_s25, 4096, %s50_s28, [#allocation6], %s1001_s9, %s1001_s9, %s1002_s10  }
  0x14   :  { %s100_s11 = sshll.u32 %s1219_s6, 4  ;;  %s1010_s4 = smov [#allocation13]   ;;  %s101_s11 = int_to_ptr.hbm [resolvable:$true] %s100_s11 }
  0x15   :  { %81 = dma.hbm_to_vmem [thread:$0]  %s74_s0, 6144, %s76_s2, [#allocation9], %s1001_s9, %s1001_s9, %s1002_s10  }
  0x16   :  { %s102_s12 = sshll.u32 %s1010_s4, 4  ;;  %s103_s12 = int_to_ptr.vmem [resolvable:$true] %s102_s12 }
  0x17   :  { %105 = dma.hbm_to_vmem [thread:$0]  %s101_s11, 128, %s103_s12, [#allocation12]  }
  0x18   :  { %990 = dma.done.wait [#allocation3], 512  }
  0x19   :  { %991 = vsyncadd [#allocation3], 4294966784 }
  0x1a   :  { %992 = dma.done.wait [#allocation6], 4608  }
  0x1b   :  { %993 = vsyncadd [#allocation6], 4294962688 }
  0x1c   :  { %994 = dma.done.wait [#allocation9], 10240  }
  0x1d   :  { %995 = vsyncadd [#allocation9], 4294957056 }
  0x1e   :  { %996 = dma.done.wait [#allocation12], 2176  }
  0x1f   :  { %997 = vsyncadd [#allocation12], 4294965120  ;;  %v329_v0 = vld [vmem:[#allocation8 + $0xf0] sm:$0xff]  ;;  %v327_v1 = vld [vmem:[#allocation8 + $0xe0] sm:$0xff]  ;;  %v138_v35 = vlaneseq  ;;  %vm437_vm6 = vcmask 1040384   ;;  %vm439_vm7 = vcmask 1041408  }
  0x20   :  { %v224_v2 = vld [vmem:[#allocation7 + $0x78] sm:$0xff]  ;;  %331 = vmatpush.msra.mxu2 %v329_v0  ;;  %v223_v4 = vld [vmem:[#allocation7 + $0x70] sm:$0xff]  ;;  %v222_v7 = vld [vmem:[#allocation7 + $0x68] sm:$0xff]  ;;  %vm441_vm8 = vcmask 1042432   ;;  %s1011_s6 = smov [#allocation14]   ;;  %s740_s15 = sshll.u32 %s1220_s7, 4  ;;  %s741_s15 = int_to_ptr.hbm [resolvable:$true] %s740_s15 }
  0x21   :  { %241 = vmatpush.msra.mxu0 %v224_v2  ;;  %v240_v3 = vld [vmem:[#allocation7 + $0xf8] sm:$0xff]  ;;  %v325_v5 = vld [vmem:[#allocation8 + $0xd0] sm:$0xff]  ;;  %v238_v8 = vld [vmem:[#allocation7 + $0xe8] sm:$0xff]  ;;  %v1092_v42 = vshrl.u32 %v138_v35, 7  ;;  %s738_s13 = sshll.u32 %s1011_s6, 4  ;;  %s739_s13 = int_to_ptr.vmem [resolvable:$true] %s738_s13 }
  0x22   :  { %270 = vmatpush.msra.mxu1 %v240_v3  ;;  %v239_v6 = vld [vmem:[#allocation7 + $0xf0] sm:$0xff]  ;;  %332 = vmatpush.msra.mxu2 %v327_v1  ;;  %v323_v9 = vld [vmem:[#allocation8 + $0xc0] sm:$0xff]  ;;  %v220_v13 = vld [vmem:[#allocation7 + $0x58] sm:$0xff] }
  0x23   :  { %242 = vmatpush.msra.mxu0 %v223_v4  ;;  %v221_v10 = vld [vmem:[#allocation7 + $0x60] sm:$0xff]  ;;  %v321_v12 = vld [vmem:[#allocation8 + $0xb0] sm:$0xff]  ;;  %v236_v14 = vld [vmem:[#allocation7 + $0xd8] sm:$0xff]  ;;  %vm171_vm0 = vcmp.lt.s32.totalorder %v1092_v42, 1  ;;  %vm192_vm1 = vcmp.lt.s32.totalorder %v1092_v42, 7  ;;  %vm772_vm2 = vcmp.ne.s32.totalorder %v1092_v42, 0 }
  0x24   :  { %271 = vmatpush.msra.mxu1 %v239_v6  ;;  %333 = vmatpush.msra.mxu2 %v325_v5  ;;  %v237_v11 = vld [vmem:[#allocation7 + $0xe0] sm:$0xff]  ;;  %v219_v16 = vld [vmem:[#allocation7 + $0x50] sm:$0xff]  ;;  %v218_v19 = vld [vmem:[#allocation7 + $0x48] sm:$0xff]  ;;  %v1114_v61 = vadd.s32 8, %v1092_v42  ;;  %v1126_v1 = vadd.s32 16, %v1092_v42  ;;  %v1139_v6 = vadd.s32 24, %v1092_v42 }
  0x25   :  { %243 = vmatpush.msra.mxu0 %v222_v7  ;;  %v319_v15 = vld [vmem:[#allocation8 + $0xa0] sm:$0xff]  ;;  %v235_v17 = vld [vmem:[#allocation7 + $0xd0] sm:$0xff]  ;;  %v234_v20 = vld [vmem:[#allocation7 + $0xc8] sm:$0xff] }
  0x26   :  { %272 = vmatpush.msra.mxu1 %v238_v8  ;;  %334 = vmatpush.msra.mxu2 %v323_v9  ;;  %v317_v18 = vld [vmem:[#allocation8 + $0x90] sm:$0xff]  ;;  %v315_v21 = vld [vmem:[#allocation8 + $0x80] sm:$0xff]  ;;  %v216_v25 = vld [vmem:[#allocation7 + $0x38] sm:$0xff]  ;;  %vm774_vm3 = vcmp.ne.s32.totalorder %v1114_v61, 15  ;;  %vm773_vm4 = vcmp.ne.s32.totalorder %v1126_v1, 16  ;;  %vm775_vm5 = vcmp.ne.s32.totalorder %v1139_v6, 31 }
  0x27   :  { %244 = vmatpush.msra.mxu0 %v221_v10  ;;  %v217_v22 = vld [vmem:[#allocation7 + $0x40] sm:$0xff]  ;;  %v313_v24 = vld [vmem:[#allocation8 + $0x70] sm:$0xff]  ;;  %v232_v26 = vld [vmem:[#allocation7 + $0xb8] sm:$0xff] }
  0x28   :  { %273 = vmatpush.msra.mxu1 %v237_v11  ;;  %335 = vmatpush.msra.mxu2 %v321_v12  ;;  %v233_v23 = vld [vmem:[#allocation7 + $0xc0] sm:$0xff]  ;;  %v215_v28 = vld [vmem:[#allocation7 + $0x30] sm:$0xff]  ;;  %v214_v31 = vld [vmem:[#allocation7 + $0x28] sm:$0xff] }
  0x29   :  { %245 = vmatpush.msra.mxu0 %v220_v13  ;;  %v311_v27 = vld [vmem:[#allocation8 + $0x60] sm:$0xff]  ;;  %v309_v29 = vld [vmem:[#allocation8 + $0x50] sm:$0xff]  ;;  %v230_v33 = vld [vmem:[#allocation7 + $0xa8] sm:$0xff] }
  0x2a   :  { %274 = vmatpush.msra.mxu1 %v236_v14  ;;  %336 = vmatpush.msra.mxu2 %v319_v15  ;;  %v231_v30 = vld [vmem:[#allocation7 + $0xb0] sm:$0xff]  ;;  %v307_v32 = vld [vmem:[#allocation8 + $0x40] sm:$0xff]  ;;  %v212_v38 = vld [vmem:[#allocation7 + $0x18] sm:$0xff] }
  0x2b   :  { %246 = vmatpush.msra.mxu0 %v219_v16  ;;  %v213_v34 = vld [vmem:[#allocation7 + $0x20] sm:$0xff]  ;;  %v305_v37 = vld [vmem:[#allocation8 + $0x30] sm:$0xff]  ;;  %v228_v39 = vld [vmem:[#allocation7 + $0x98] sm:$0xff] }
  0x2c   :  { %275 = vmatpush.msra.mxu1 %v235_v17  ;;  %337 = vmatpush.msra.mxu2 %v317_v18  ;;  %v229_v36 = vld [vmem:[#allocation7 + $0xa0] sm:$0xff]  ;;  %v1090_v41 = vld [vmem:[#allocation2 + $0x18] sm:$0xff]  ;;  %v1094_v43 = vld [vmem:[#allocation2 + $0x8] sm:$0xff] }
  0x2d   :  { %247 = vmatpush.msra.mxu0 %v218_v19  ;;  %v1088_v40 = vld [vmem:[#allocation2] sm:$0xff]  ;;  %v211_v45 = vld [vmem:[#allocation7 + $0x10] sm:$0xff]  ;;  %v210_v48 = vld [vmem:[#allocation7 + $0x8] sm:$0xff]  ;;  %v170_v50 = vrot.slane %v1090_v41, 7  ;;  %v189_v52 = vrot.slane %v1094_v43, 1  ;;  %v168_v60 = vrot.slane %v1094_v43, 7 }
  0x2e   :  { %276 = vmatpush.msra.mxu1 %v234_v20  ;;  %338 = vmatpush.msra.mxu2 %v315_v21  ;;  %v303_v44 = vld [vmem:[#allocation8 + $0x20] sm:$0xff]  ;;  %v227_v46 = vld [vmem:[#allocation7 + $0x90] sm:$0xff]  ;;  %v167_v49 = vrot.slane %v1088_v40, 7  ;;  %v188_v51 = vrot.slane %v1088_v40, 1  ;;  %v226_v53 = vld [vmem:[#allocation7 + $0x88] sm:$0xff]  ;;  %v191_v3 = vrot.slane %v1090_v41, 1 }
  0x2f   :  { %248 = vmatpush.msra.mxu0 %v217_v22  ;;  %v301_v47 = vld [vmem:[#allocation8 + $0x10] sm:$0xff]  ;;  %v299_v54 = vld [vmem:[#allocation8] sm:$0xff]  ;;  %v458_v9 = vld [vmem:[#allocation11 + $0x78] sm:$0xff] }
  0x30   :  { %277 = vmatpush.msra.mxu1 %v233_v23  ;;  %339 = vmatpush.msra.mxu2 %v313_v24  ;;  %v209_v55 = vld [vmem:[#allocation7] sm:$0xff]  ;;  %v175_v57 = vsel %vm171_vm0, %v170_v50, %v167_v49  ;;  %v195_v58 = vsel %vm192_vm1, %v188_v51, %v189_v52  ;;  %v1107_v59 = vld [vmem:[#allocation2 + $0x10] sm:$0xff]  ;;  %v174_v63 = vsel %vm171_vm0, %v167_v49, %v168_v60  ;;  %v456_v11 = vld [vmem:[#allocation11 + $0x68] sm:$0xff] }
  0x31   :  { %249 = vmatpush.msra.mxu0 %v216_v25  ;;  %v225_v56 = vld [vmem:[#allocation7 + $0x80] sm:$0xff]  ;;  %v190_v62 = vrot.slane %v1107_v59, 1  ;;  %v169_v2 = vrot.slane %v1107_v59, 7  ;;  %v196_v8 = vsel %vm192_vm1, %v191_v3, %v188_v51  ;;  %v457_v10 = vld [vmem:[#allocation11 + $0x70] sm:$0xff]  ;;  %v454_v13 = vld [vmem:[#allocation11 + $0x58] sm:$0xff] }
  0x32   :  { %278 = vmatpush.msra.mxu1 %v232_v26  ;;  %340 = vmatpush.msra.mxu2 %v311_v27  ;;  %v455_v12 = vld [vmem:[#allocation11 + $0x60] sm:$0xff]  ;;  %v453_v14 = vld [vmem:[#allocation11 + $0x50] sm:$0xff]  ;;  %v452_v15 = vld [vmem:[#allocation11 + $0x48] sm:$0xff] }
  0x33   :  { %250 = vmatpush.msra.mxu0 %v215_v28  ;;  %v194_v0 = vsel %vm192_vm1, %v189_v52, %v190_v62  ;;  %v173_v4 = vsel %vm171_vm0, %v168_v60, %v169_v2  ;;  %v193_v5 = vsel %vm192_vm1, %v190_v62, %v191_v3  ;;  %v172_v7 = vsel %vm171_vm0, %v169_v2, %v170_v50  ;;  %v451_v18 = vld [vmem:[#allocation11 + $0x40] sm:$0xff]  ;;  %v450_v19 = vld [vmem:[#allocation11 + $0x38] sm:$0xff]  ;;  %v449_v21 = vld [vmem:[#allocation11 + $0x30] sm:$0xff] }
  0x34   :  { %279 = vmatpush.msra.mxu1 %v231_v30  ;;  %341 = vmatpush.msra.mxu2 %v309_v29  ;;  %v448_v22 = vld [vmem:[#allocation11 + $0x28] sm:$0xff]  ;;  %v447_v26 = vld [vmem:[#allocation11 + $0x20] sm:$0xff]  ;;  %v446_v28 = vld [vmem:[#allocation11 + $0x18] sm:$0xff] }
  0x35   :  { %251 = vmatpush.msra.mxu0 %v214_v31  ;;  %v445_v29 = vld [vmem:[#allocation11 + $0x10] sm:$0xff]  ;;  %v788_v31 = vld [vmem:[#allocation13] ss:$0 sm:$0xff]  ;;  %v326_v49 = vld [vmem:[#allocation8 + $0xd8] sm:$0xff] }
  0x36   :  { %280 = vmatpush.msra.mxu1 %v230_v33  ;;  %342 = vmatpush.msra.mxu2 %v307_v32  ;;  %v444_v33 = vld [vmem:[#allocation11 + $0x8] sm:$0xff]  ;;  %v443_v35 = vld [vmem:[#allocation11] sm:$0xff]  ;;  %v318_v2 = vld [vmem:[#allocation8 + $0x98] sm:$0xff] }
  0x37   :  { %252 = vmatpush.msra.mxu0 %v213_v34 }
  0x38   :  { %281 = vmatpush.msra.mxu1 %v229_v36  ;;  %343 = vmatpush.msra.mxu2 %v305_v37 }
  0x39   :  { %253 = vmatpush.msra.mxu0 %v212_v38 }
  0x3a   :  { %282 = vmatpush.msra.mxu1 %v228_v39  ;;  %344 = vmatpush.msra.mxu2 %v303_v44 }
  0x3b   :  { %254 = vmatpush.msra.mxu0 %v211_v45  ;;  %v330_v45 = vld [vmem:[#allocation8 + $0xf8] sm:$0xff] }
  0x3c   :  { %283 = vmatpush.msra.mxu1 %v227_v46  ;;  %345 = vmatpush.msra.mxu2 %v301_v47  ;;  %v328_v46 = vld [vmem:[#allocation8 + $0xe8] sm:$0xff] }
  0x3d   :  { %255 = vmatpush.msra.mxu0 %v210_v48  ;;  %360 = vmatpush.msra.mxu3 %v330_v45  ;;  %v310_v45 = vld [vmem:[#allocation8 + $0x58] sm:$0xff] }
  0x3e   :  { %284 = vmatpush.msra.mxu1 %v226_v53  ;;  %346 = vmatpush.msra.mxu2 %v299_v54  ;;  %v324_v53 = vld [vmem:[#allocation8 + $0xc8] sm:$0xff] }
  0x3f   :  { %256 = vmatpush.msra.mxu0 %v209_v55  ;;  %347 = vmatmul.f32.vlgmr.msra.gmra.mxu2 %v1088_v40 }
  0x40   :  { %285 = vmatpush.msra.mxu1 %v225_v56  ;;  %757 = vmatmul.msk.f32.vlgmr.msra.gmra.mxu0 %vm772_vm2, %v175_v57  ;;  %v322_v56 = vld [vmem:[#allocation8 + $0xb8] sm:$0xff] }
  0x41   :  { %286 = vmatmul.f32.vlgmr.msra.gmra.mxu1 %v195_v58  ;;  %459 = vmatpush.msrb.mxu0 %v458_v9 }
  0x42   :  { %361 = vmatpush.msra.mxu3 %v328_v46  ;;  %v308_v46 = vld [vmem:[#allocation8 + $0x48] sm:$0xff] }
  0x43   :  { %460 = vmatpush.msrb.mxu0 %v457_v10  ;;  %v314_v10 = vld [vmem:[#allocation8 + $0x78] sm:$0xff] }
  0x44   :  { %362 = vmatpush.msra.mxu3 %v326_v49  ;;  %v302_v49 = vld [vmem:[#allocation8 + $0x18] sm:$0xff] }
  0x45   :  { %461 = vmatpush.msrb.mxu0 %v456_v11 }
  0x46   :  { %363 = vmatpush.msra.mxu3 %v324_v53  ;;  %v604_v53 = vld [vmem:[#allocation10 + $0x178] sm:$0xff] }
  0x47   :  { %350 = vmatmul.f32.gmra.mxu2 %v1094_v43  ;;  %462 = vmatpush.msrb.mxu0 %v455_v12 }
  0x48   :  { %260 = vmatmul.f32.gmra.mxu0 %v174_v63  ;;  %v320_v63 = vld [vmem:[#allocation8 + $0xa8] sm:$0xff]  ;;  %364 = vmatpush.msra.mxu3 %v322_v56  ;;  %v603_v56 = vld [vmem:[#allocation10 + $0x170] sm:$0xff] }
  0x49   :  { %761 = vmatmul.msk.f32.gmra.mxu1 %vm774_vm3, %v194_v0  ;;  %463 = vmatpush.msrb.mxu0 %v454_v13 }
  0x4a   :  { %365 = vmatpush.msra.mxu3 %v320_v63  ;;  %v584_v63 = vld [vmem:[#allocation10 + $0xd8] sm:$0xff] }
  0x4b   :  { %464 = vmatpush.msrb.mxu0 %v453_v14 }
  0x4c   :  { %366 = vmatpush.msra.mxu3 %v318_v2  ;;  %v583_v2 = vld [vmem:[#allocation10 + $0xd0] sm:$0xff] }
  0x4d   :  { %465 = vmatpush.msrb.mxu0 %v452_v15 }
  0x4f   :  { %353 = vmatmul.f32.gmra.mxu2 %v1107_v59  ;;  %466 = vmatpush.msrb.mxu0 %v451_v18 }
  0x50   :  { %759 = vmatmul.msk.f32.gmra.mxu0 %vm773_vm4, %v173_v4 }
  0x51   :  { %292 = vmatmul.f32.gmra.mxu1 %v193_v5  ;;  %467 = vmatpush.msrb.mxu0 %v450_v19 }
  0x53   :  { %468 = vmatpush.msrb.mxu0 %v449_v21 }
  0x55   :  { %469 = vmatpush.msrb.mxu0 %v448_v22 }
  0x57   :  { %356 = vmatmul.f32.gmra.mxu2 %v1090_v41  ;;  %470 = vmatpush.msrb.mxu0 %v447_v26 }
  0x58   :  { %266 = vmatmul.f32.gmra.mxu0 %v172_v7 }
  0x59   :  { %763 = vmatmul.msk.f32.gmra.mxu1 %vm775_vm5, %v196_v8  ;;  %471 = vmatpush.msrb.mxu0 %v446_v28  ;;  %v316_v8 = vld [vmem:[#allocation8 + $0x88] sm:$0xff] }
  0x5a   :  { %367 = vmatpush.msra.mxu3 %v316_v8  ;;  %v599_v8 = vld [vmem:[#allocation10 + $0x150] sm:$0xff] }
  0x5b   :  { %472 = vmatpush.msrb.mxu0 %v445_v29 }
  0x5c   :  { %368 = vmatpush.msra.mxu3 %v314_v10  ;;  %v567_v10 = vld [vmem:[#allocation10 + $0x50] sm:$0xff] }
  0x5d   :  { %473 = vmatpush.msrb.mxu0 %v444_v33 }
  0x5f   :  { %474 = vmatpush.msrb.mxu0 %v443_v35 }
  0xbd   :  { %v258_v16 = vpop.f32.mrf.mxu0 }
  0xbe   :  { %v287_v17 = vpop.f32.mrf.mxu1 }
  0xbf   :  { %v288_v25 = vadd.f32 %v287_v17, %v258_v16 }
  0xc2   :  { %v348_v20 = vpop.f32.mrf.mxu2 }
  0xc3   :  { %v389_v30 = vadd.f32 %v348_v20, %v288_v25 }
  0xc5   :  { %v261_v23 = vpop.f32.mrf.mxu0  ;;  %v1151_v39 = vadd.f32 %v788_v31, %v389_v30 }
  0xc6   :  { %v290_v24 = vpop.f32.mrf.mxu1 }
  0xc7   :  { %v291_v27 = vadd.f32 %v290_v24, %v261_v23  ;;  %v419_v47 = vmul.f32 %v1151_v39, %v1151_v39 }
  0xca   :  { %v351_v32 = vpop.f32.mrf.mxu2 }
  0xcb   :  { %v390_v34 = vadd.f32 %v351_v32, %v291_v27 }
  0xcd   :  { %v1149_v36 = vadd.f32 %v788_v31, %v390_v34  ;;  %v264_v37 = vpop.f32.mrf.mxu0 }
  0xce   :  { %v293_v38 = vpop.f32.mrf.mxu1 }
  0xcf   :  { %v420_v44 = vmul.f32 %v1149_v36, %v1149_v36  ;;  %v405_v50 = vadd.f32 %v1149_v36, %v1151_v39  ;;  %v294_v51 = vadd.f32 %v293_v38, %v264_v37 }
  0xd1   :  { %v421_v52 = vadd.f32 %v420_v44, %v419_v47  ;;  %v406_v57 = vrot.slane %v405_v50, 4  ;;  %v312_v44 = vld [vmem:[#allocation8 + $0x68] sm:$0xff]  ;;  %v306_v47 = vld [vmem:[#allocation8 + $0x38] sm:$0xff] }
  0xd2   :  { %v354_v48 = vpop.f32.mrf.mxu2  ;;  %369 = vmatpush.msra.mxu3 %v312_v44  ;;  %v559_v44 = vld [vmem:[#allocation10 + $0x10] sm:$0xff] }
  0xd3   :  { %v391_v58 = vadd.f32 %v354_v48, %v294_v51  ;;  %v422_v62 = vrot.slane %v421_v52, 4  ;;  %v407_v3 = vadd.f32 %v406_v57, %v405_v50  ;;  %v304_v48 = vld [vmem:[#allocation8 + $0x28] sm:$0xff]  ;;  %v588_v50 = vld [vmem:[#allocation10 + $0xf8] sm:$0xff]  ;;  %v571_v57 = vld [vmem:[#allocation10 + $0x70] sm:$0xff] }
  0xd4   :  { %370 = vmatpush.msra.mxu3 %v310_v45  ;;  %636 = vmatpush.msrb.mxu2 %v588_v50  ;;  %v300_v51 = vld [vmem:[#allocation8 + $0x8] sm:$0xff]  ;;  %v573_v45 = vld [vmem:[#allocation10 + $0x80] sm:$0xff] }
  0xd5   :  { %v267_v54 = vpop.f32.mrf.mxu0  ;;  %v1159_v4 = vadd.f32 %v788_v31, %v391_v58  ;;  %v423_v7 = vadd.f32 %v422_v62, %v421_v52  ;;  %v408_v11 = vrot.slane %v407_v3, 2  ;;  %v587_v52 = vld [vmem:[#allocation10 + $0xf0] sm:$0xff]  ;;  %v585_v58 = vld [vmem:[#allocation10 + $0xe0] sm:$0xff]  ;;  %v570_v62 = vld [vmem:[#allocation10 + $0x68] sm:$0xff] }
  0xd6   :  { %v296_v55 = vpop.f32.mrf.mxu1  ;;  %371 = vmatpush.msra.mxu3 %v308_v46  ;;  %637 = vmatpush.msrb.mxu2 %v587_v52  ;;  %v590_v46 = vld [vmem:[#allocation10 + $0x108] sm:$0xff] }
  0xd7   :  { %v297_v60 = vadd.f32 %v296_v55, %v267_v54  ;;  %v428_v12 = vmul.f32 %v1159_v4, %v1159_v4  ;;  %v424_v15 = vrot.slane %v423_v7, 2  ;;  %v409_v18 = vadd.f32 %v408_v11, %v407_v3  ;;  %v572_v54 = vld [vmem:[#allocation10 + $0x78] sm:$0xff]  ;;  %v586_v55 = vld [vmem:[#allocation10 + $0xe8] sm:$0xff]  ;;  %v581_v11 = vld [vmem:[#allocation10 + $0xc0] sm:$0xff] }
  0xd8   :  { %372 = vmatpush.msra.mxu3 %v306_v47  ;;  %607 = vmatpush.msrb.mxu1 %v572_v54  ;;  %v600_v3 = vld [vmem:[#allocation10 + $0x158] sm:$0xff]  ;;  %v558_v47 = vld [vmem:[#allocation10 + $0x8] sm:$0xff]  ;;  %v789_v54 = vld [vmem:[#allocation13 + $0x3] ss:$0 sm:$0xff] }
  0xd9   :  { %v425_v21 = vadd.f32 %v424_v15, %v423_v7  ;;  %v410_v25 = vrot.slane %v409_v18, 1  ;;  %638 = vmatpush.msrb.mxu2 %v586_v55  ;;  %v582_v7 = vld [vmem:[#allocation10 + $0xc8] sm:$0xff]  ;;  %v565_v15 = vld [vmem:[#allocation10 + $0x40] sm:$0xff] }
  0xda   :  { %v357_v0 = vpop.f32.mrf.mxu2  ;;  %373 = vmatpush.msra.mxu3 %v304_v48  ;;  %608 = vmatpush.msrb.mxu1 %v571_v57  ;;  %v557_v48 = vld [vmem:[#allocation10] sm:$0xff] }
  0xdb   :  { %v392_v5 = vadd.f32 %v357_v0, %v297_v60  ;;  %v426_v27 = vrot.slane %v425_v21, 1  ;;  %v411_v30 = vadd.f32 %v410_v25, %v409_v18  ;;  %639 = vmatpush.msrb.mxu2 %v585_v58  ;;  %v602_v60 = vld [vmem:[#allocation10 + $0x168] sm:$0xff]  ;;  %v569_v0 = vld [vmem:[#allocation10 + $0x60] sm:$0xff]  ;;  %v596_v18 = vld [vmem:[#allocation10 + $0x138] sm:$0xff] }
  0xdc   :  { %374 = vmatpush.msra.mxu3 %v302_v49  ;;  %609 = vmatpush.msrb.mxu1 %v570_v62  ;;  %v577_v25 = vld [vmem:[#allocation10 + $0xa0] sm:$0xff] }
  0xdd   :  { %v1161_v9 = vadd.f32 %v788_v31, %v392_v5  ;;  %v427_v33 = vadd.f32 %v426_v27, %v425_v21  ;;  %640 = vmatpush.msrb.mxu2 %v584_v63  ;;  %v568_v5 = vld [vmem:[#allocation10 + $0x58] sm:$0xff]  ;;  %v578_v21 = vld [vmem:[#allocation10 + $0xa8] sm:$0xff]  ;;  %v791_v63 = vld [vmem:[#allocation13 + $0x4] ss:$0 sm:$0xff] }
  0xde   :  { %375 = vmatpush.msra.mxu3 %v300_v51  ;;  %610 = vmatpush.msrb.mxu1 %v569_v0  ;;  %v562_v27 = vld [vmem:[#allocation10 + $0x28] sm:$0xff] }
  0xdf   :  { %v412_v13 = vadd.f32 %v1161_v9, %v1159_v4  ;;  %v429_v14 = vmul.f32 %v1161_v9, %v1161_v9  ;;  %376 = vmatmul.f32.vlgmr.msra.gmra.mxu3 %v1088_v40  ;;  %v601_v40 = vld [vmem:[#allocation10 + $0x160] sm:$0xff]  ;;  %641 = vmatpush.msrb.mxu2 %v583_v2 }
  0xe0   :  { %665 = vmatpush.msrb.mxu3 %v604_v53  ;;  %611 = vmatpush.msrb.mxu1 %v568_v5 }
  0xe1   :  { %v413_v16 = vrot.slane %v412_v13, 4  ;;  %v430_v17 = vadd.f32 %v429_v14, %v428_v12  ;;  %642 = vmatpush.msrb.mxu2 %v582_v7  ;;  %v598_v12 = vld [vmem:[#allocation10 + $0x148] sm:$0xff]  ;;  %v580_v14 = vld [vmem:[#allocation10 + $0xb8] sm:$0xff] }
  0xe2   :  { %666 = vmatpush.msrb.mxu3 %v603_v56  ;;  %612 = vmatpush.msrb.mxu1 %v567_v10  ;;  %v790_v56 = vld [vmem:[#allocation13 + $0x5] ss:$0 sm:$0xff] }
  0xe3   :  { %v414_v19 = vadd.f32 %v413_v16, %v412_v13  ;;  %v431_v20 = vrot.slane %v430_v17, 4  ;;  %643 = vmatpush.msrb.mxu2 %v581_v11  ;;  %v566_v13 = vld [vmem:[#allocation10 + $0x48] sm:$0xff]  ;;  %v579_v16 = vld [vmem:[#allocation10 + $0xb0] sm:$0xff] }
  0xe4   :  { %667 = vmatpush.msrb.mxu3 %v602_v60  ;;  %613 = vmatpush.msrb.mxu1 %v566_v13 }
  0xe5   :  { %v415_v22 = vrot.slane %v414_v19, 2  ;;  %v432_v23 = vadd.f32 %v431_v20, %v430_v17  ;;  %644 = vmatpush.msrb.mxu2 %v580_v14 }
  0xe6   :  { %668 = vmatpush.msrb.mxu3 %v601_v40  ;;  %614 = vmatpush.msrb.mxu1 %v565_v15 }
  0xe7   :  { %v416_v24 = vadd.f32 %v415_v22, %v414_v19  ;;  %v433_v26 = vrot.slane %v432_v23, 2  ;;  %379 = vmatmul.f32.gmra.mxu3 %v1094_v43  ;;  %v597_v43 = vld [vmem:[#allocation10 + $0x140] sm:$0xff]  ;;  %645 = vmatpush.msrb.mxu2 %v579_v16  ;;  %v564_v19 = vld [vmem:[#allocation10 + $0x38] sm:$0xff]  ;;  %v595_v22 = vld [vmem:[#allocation10 + $0x130] sm:$0xff] }
  0xe8   :  { %669 = vmatpush.msrb.mxu3 %v600_v3  ;;  %615 = vmatpush.msrb.mxu1 %v564_v19 }
  0xe9   :  { %v417_v28 = vrot.slane %v416_v24, 1  ;;  %v434_v29 = vadd.f32 %v433_v26, %v432_v23  ;;  %646 = vmatpush.msrb.mxu2 %v578_v21  ;;  %v563_v23 = vld [vmem:[#allocation10 + $0x30] sm:$0xff]  ;;  %v594_v26 = vld [vmem:[#allocation10 + $0x128] sm:$0xff] }
  0xea   :  { %670 = vmatpush.msrb.mxu3 %v599_v8  ;;  %616 = vmatpush.msrb.mxu1 %v563_v23 }
  0xeb   :  { %v418_v31 = vadd.f32 %v417_v28, %v416_v24  ;;  %v435_v32 = vrot.slane %v434_v29, 1  ;;  %647 = vmatpush.msrb.mxu2 %v577_v25  ;;  %v576_v28 = vld [vmem:[#allocation10 + $0x98] sm:$0xff] }
  0xec   :  { %671 = vmatpush.msrb.mxu3 %v598_v12  ;;  %617 = vmatpush.msrb.mxu1 %v562_v27 }
  0xed   :  { %v436_v34 = vadd.f32 %v435_v32, %v434_v29  ;;  %v438_v35 = vsel %vm437_vm6, %v411_v30, %v418_v31  ;;  %648 = vmatpush.msrb.mxu2 %v576_v28  ;;  %v593_v29 = vld [vmem:[#allocation10 + $0x120] sm:$0xff]  ;;  %v575_v32 = vld [vmem:[#allocation10 + $0x90] sm:$0xff] }
  0xee   :  { %v440_v37 = vsel %vm439_vm7, %v438_v35, %v427_v33  ;;  %672 = vmatpush.msrb.mxu3 %v597_v43  ;;  %v561_v30 = vld [vmem:[#allocation10 + $0x20] sm:$0xff]  ;;  %v592_v33 = vld [vmem:[#allocation10 + $0x118] sm:$0xff] }
  0xef   :  { %v442_v38 = vsel %vm441_vm8, %v440_v37, %v436_v34  ;;  %382 = vmatmul.f32.gmra.mxu3 %v1107_v59  ;;  %618 = vmatpush.msrb.mxu1 %v561_v30  ;;  %v560_v34 = vld [vmem:[#allocation10 + $0x18] sm:$0xff]  ;;  %v574_v37 = vld [vmem:[#allocation10 + $0x88] sm:$0xff] }
  0xf0   :  { %475 = vmatmul.f32.vlgmr.msrb.gmra.mxu0 %v442_v38  ;;  %673 = vmatpush.msrb.mxu3 %v596_v18  ;;  %v591_v38 = vld [vmem:[#allocation10 + $0x110] sm:$0xff] }
  0xf1   :  { %649 = vmatpush.msrb.mxu2 %v575_v32  ;;  %619 = vmatpush.msrb.mxu1 %v560_v34 }
  0xf2   :  { %674 = vmatpush.msrb.mxu3 %v595_v22 }
  0xf3   :  { %650 = vmatpush.msrb.mxu2 %v574_v37  ;;  %620 = vmatpush.msrb.mxu1 %v559_v44  ;;  %v793_v44 = vld [vmem:[#allocation13 + $0x2] ss:$0 sm:$0xff] }
  0xf4   :  { %675 = vmatpush.msrb.mxu3 %v594_v26 }
  0xf5   :  { %651 = vmatpush.msrb.mxu2 %v573_v45  ;;  %621 = vmatpush.msrb.mxu1 %v558_v47 }
  0xf6   :  { %676 = vmatpush.msrb.mxu3 %v593_v29 }
  0xf7   :  { %385 = vmatmul.f32.gmra.mxu3 %v1090_v41  ;;  %v589_v41 = vld [vmem:[#allocation10 + $0x100] sm:$0xff]  ;;  %622 = vmatpush.msrb.mxu1 %v557_v48 }
  0xf8   :  { %677 = vmatpush.msrb.mxu3 %v592_v33 }
  0xfa   :  { %678 = vmatpush.msrb.mxu3 %v591_v38 }
  0xfc   :  { %679 = vmatpush.msrb.mxu3 %v590_v46 }
  0xfe   :  { %680 = vmatpush.msrb.mxu3 %v589_v41  ;;  %v792_v41 = vld [vmem:[#allocation13 + $0x1] ss:$0 sm:$0xff] }
 0x162   :  { %v377_v34 = vpop.f32.mrf.mxu3 }
 0x163   :  { %v401_v6 = vadd.f32 %v792_v41, %v377_v34 }
 0x16d   :  { %v1171_v17 = vpop.f32.mrf.mxu0 }
 0x16e   :  { %v479_v20 = vmul.f32 %v1171_v17, %v1171_v17 }
 0x170   :  { %v481_v24 = vrot.slane %v479_v20, 6 }
 0x172   :  { %v483_v59 = vsub.f32 %v1171_v17, %v481_v24 }
 0x174   :  { %v484_v31 = vmax.f32 %v483_v59, 0.0 }
 0x176   :  { %v485_v35 = vadd.f32 1e-05, %v484_v31 }
 0x178   :  { %796 = vrsqrt.f32 %v485_v35  ;;  %vm492_vm10 = vweird.f32 %v485_v35 }
 0x17e   :  { %v797_v49 = vpop.eup %796 }
 0x17f   :  { %v487_v50 = vmul.f32 %v797_v49, %v485_v35  ;;  %vm493_vm9 = vweird.f32 %v797_v49  ;;  %v380_v35 = vpop.f32.mrf.mxu3 }
 0x180   :  { %vm494_vm11 = vmor %vm492_vm10, %vm493_vm9 }
 0x181   :  { %v488_v51 = vmul.f32 %v797_v49, %v487_v50  ;;  %v795_v50 = vld [vmem:[#allocation13 + $0x7] ss:$0 sm:$0xff] }
 0x183   :  { %v489_v52 = vmul.f32 0.5, %v488_v51 }
 0x185   :  { %v490_v53 = vsub.f32 1.5, %v489_v52  ;;  %v717_v52 = vld [vmem:[#allocation5] sm:$0xff] }
 0x187   :  { %v491_v55 = vmul.f32 %v797_v49, %v490_v53  ;;  %v383_v37 = vpop.f32.mrf.mxu3 }
 0x189   :  { %v495_v57 = vsel %vm494_vm11, %v797_v49, %v491_v55 }
 0x18a   :  { %v498_v58 = vmul.f32 %v789_v54, %v495_v57  ;;  %v794_v54 = vld [vmem:[#allocation13 + $0x6] ss:$0 sm:$0xff] }
 0x18c   :  { %v501_v60 = vadd.f32 %v790_v56, %v498_v58  ;;  %v504_v62 = vrot.slane %v498_v58, 2  ;;  %v722_v58 = vmul.f32 %v795_v50, %v717_v52 }
 0x18e   :  { %v506_v40 = vmul.f32 %v504_v62, %v1171_v17  ;;  %v509_v0 = vperm.slane %v501_v60, 2  ;;  %v521_v2 = vperm.slane %v501_v60, 3 }
 0x18f   :  { %v386_v38 = vpop.f32.mrf.mxu3 }
 0x190   :  { %v508_v3 = vsub.f32 %v791_v63, %v506_v40  ;;  %v511_v5 = vmul.f32 %v509_v0, %v1149_v36  ;;  %v523_v8 = vmul.f32 %v521_v2, %v1161_v9  ;;  %v510_v11 = vmul.f32 %v509_v0, %v1151_v39 }
 0x191   :  { %v522_v12 = vmul.f32 %v521_v2, %v1159_v4 }
 0x192   :  { %v512_v7 = vperm.slane %v508_v3, 0  ;;  %v524_v10 = vperm.slane %v508_v3, 1 }
 0x194   :  { %v514_v13 = vadd.f32 %v512_v7, %v511_v5  ;;  %v526_v14 = vadd.f32 %v524_v10, %v523_v8  ;;  %v513_v43 = vadd.f32 %v512_v7, %v510_v11  ;;  %v525_v15 = vadd.f32 %v524_v10, %v522_v12  ;;  %v718_v5 = vld [vmem:[#allocation5 + $0x8] sm:$0xff] }
 0x195   :  { %v402_v8 = vadd.f32 %v792_v41, %v380_v35 }
 0x196   :  { %v518_v16 = vmul.f32 0.2, %v514_v13  ;;  %vm528_vm12 = vcmp.gt.f32.partialorder %v526_v14, 0.0  ;;  %vm515_vm13 = vcmp.gt.f32.partialorder %v513_v43, 0.0  ;;  %v530_v17 = vmul.f32 0.2, %v526_v14 }
 0x197   :  { %v517_v18 = vmul.f32 0.2, %v513_v43  ;;  %vm516_vm14 = vcmp.gt.f32.partialorder %v514_v13, 0.0  ;;  %v529_v36 = vmul.f32 0.2, %v525_v15  ;;  %vm527_vm15 = vcmp.gt.f32.partialorder %v525_v15, 0.0 }
 0x198   :  { %v520_v19 = vsel %vm516_vm14, %v514_v13, %v518_v16  ;;  %v532_v21 = vsel %vm528_vm12, %v526_v14, %v530_v17  ;;  %v723_v13 = vmul.f32 %v795_v50, %v718_v5 }
 0x199   :  { %v519_v20 = vsel %vm515_vm13, %v513_v43, %v517_v18  ;;  %v546_v9 = vrot.slane %v520_v19, 1  ;;  %v536_v39 = vrot.slane %v532_v21, 7  ;;  %v531_v25 = vsel %vm527_vm15, %v525_v15, %v529_v36  ;;  %v719_v36 = vld [vmem:[#allocation5 + $0x10] sm:$0xff] }
 0x19a   :  { %v533_v22 = vrot.slane %v519_v20, 7  ;;  %v545_v23 = vrot.slane %v519_v20, 1  ;;  %652 = vmatmul.f32.vlgmr.msrb.gmra.mxu2 %v519_v20  ;;  %v534_v26 = vrot.slane %v520_v19, 7  ;;  %v547_v27 = vrot.slane %v531_v25, 1 }
 0x19b   :  { %v535_v29 = vrot.slane %v531_v25, 7  ;;  %v548_v30 = vrot.slane %v532_v21, 1 }
 0x19c   :  { %v540_v4 = vsel %vm171_vm0, %v536_v39, %v533_v22  ;;  %v551_v24 = vsel %vm192_vm1, %v545_v23, %v546_v9  ;;  %v539_v59 = vsel %vm171_vm0, %v533_v22, %v534_v26  ;;  %v550_v28 = vsel %vm192_vm1, %v546_v9, %v547_v27 }
 0x19d   :  { %765 = vmatmul.msk.f32.vlgmr.msrb.gmra.mxu1 %vm772_vm2, %v540_v4  ;;  %681 = vmatmul.f32.vlgmr.msrb.gmra.mxu3 %v551_v24  ;;  %v538_v31 = vsel %vm171_vm0, %v534_v26, %v535_v29  ;;  %v549_v32 = vsel %vm192_vm1, %v547_v27, %v548_v30  ;;  %v537_v33 = vsel %vm171_vm0, %v535_v29, %v536_v39 }
 0x19e   :  { %v552_v61 = vsel %vm192_vm1, %v548_v30, %v545_v23  ;;  %v724_v39 = vmul.f32 %v795_v50, %v719_v36  ;;  %v404_v29 = vadd.f32 %v792_v41, %v386_v38 }
 0x1a2   :  { %655 = vmatmul.f32.gmra.mxu2 %v520_v19 }
 0x1a5   :  { %626 = vmatmul.f32.gmra.mxu1 %v539_v59  ;;  %769 = vmatmul.msk.f32.gmra.mxu3 %vm774_vm3, %v550_v28  ;;  %v720_v28 = vld [vmem:[#allocation5 + $0x18] sm:$0xff] }
 0x1aa   :  { %658 = vmatmul.f32.gmra.mxu2 %v531_v25 }
 0x1ad   :  { %767 = vmatmul.msk.f32.gmra.mxu1 %vm773_vm4, %v538_v31  ;;  %687 = vmatmul.f32.gmra.mxu3 %v549_v32  ;;  %v725_v32 = vmul.f32 %v795_v50, %v720_v28 }
 0x1b2   :  { %661 = vmatmul.f32.gmra.mxu2 %v532_v21  ;;  %v403_v21 = vadd.f32 %v792_v41, %v383_v37 }
 0x1b5   :  { %632 = vmatmul.f32.gmra.mxu1 %v537_v33  ;;  %771 = vmatmul.msk.f32.gmra.mxu3 %vm775_vm5, %v552_v61 }
 0x21a   :  { %v624_v45 = vpop.f32.mrf.mxu1 }
 0x21b   :  { %v625_v1 = vadd.f32 %v793_v44, %v624_v45 }
 0x21d   :  { %v653_v46 = vpop.f32.mrf.mxu2 }
 0x21e   :  { %v654_v47 = vadd.f32 %v653_v46, %v625_v1 }
 0x220   :  { %v682_v48 = vpop.f32.mrf.mxu3 }
 0x221   :  { %v683_v49 = vadd.f32 %v682_v48, %v654_v47 }
 0x222   :  { %v627_v51 = vpop.f32.mrf.mxu1 }
 0x223   :  { %vm694_vm0 = vcmp.gt.f32.partialorder %v683_v49, 0.0  ;;  %v698_v42 = vmul.f32 0.2, %v683_v49  ;;  %v628_v53 = vadd.f32 %v793_v44, %v627_v51 }
 0x225   :  { %v702_v55 = vsel %vm694_vm0, %v683_v49, %v698_v42  ;;  %v656_v56 = vpop.f32.mrf.mxu2 }
 0x226   :  { %v706_v57 = vadd.f32 %v702_v55, %v401_v6  ;;  %v657_v60 = vadd.f32 %v656_v56, %v628_v53 }
 0x228   :  { %v712_v62 = vmul.f32 %v794_v54, %v706_v57  ;;  %v685_v63 = vpop.f32.mrf.mxu3 }
 0x229   :  { %v686_v40 = vadd.f32 %v685_v63, %v657_v60 }
 0x22a   :  { %v726_v0 = vadd.f32 %v722_v58, %v712_v62  ;;  %v630_v2 = vpop.f32.mrf.mxu1 }
 0x22b   :  { %vm695_vm1 = vcmp.gt.f32.partialorder %v686_v40, 0.0  ;;  %v699_v3 = vmul.f32 0.2, %v686_v40  ;;  %v631_v7 = vadd.f32 %v793_v44, %v630_v2 }
 0x22c   :  { %730 = vst [vmem:[#allocation14] sm:$0xff] %v726_v0 }
 0x22d   :  { %v703_v10 = vsel %vm695_vm1, %v686_v40, %v699_v3  ;;  %v659_v11 = vpop.f32.mrf.mxu2 }
 0x22e   :  { %v707_v12 = vadd.f32 %v703_v10, %v402_v8  ;;  %v660_v14 = vadd.f32 %v659_v11, %v631_v7 }
 0x230   :  { %v713_v43 = vmul.f32 %v794_v54, %v707_v12  ;;  %v688_v15 = vpop.f32.mrf.mxu3 }
 0x231   :  { %v689_v16 = vadd.f32 %v688_v15, %v660_v14 }
 0x232   :  { %v727_v17 = vadd.f32 %v723_v13, %v713_v43  ;;  %v633_v18 = vpop.f32.mrf.mxu1 }
 0x233   :  { %vm696_vm2 = vcmp.gt.f32.partialorder %v689_v16, 0.0  ;;  %v700_v19 = vmul.f32 0.2, %v689_v16  ;;  %v634_v20 = vadd.f32 %v793_v44, %v633_v18 }
 0x234   :  { %731 = vst [vmem:[#allocation14 + $0x8] sm:$0xff] %v727_v17 }
 0x235   :  { %v704_v9 = vsel %vm696_vm2, %v689_v16, %v700_v19  ;;  %v662_v22 = vpop.f32.mrf.mxu2 }
 0x236   :  { %v708_v23 = vadd.f32 %v704_v9, %v403_v21  ;;  %v663_v4 = vadd.f32 %v662_v22, %v634_v20 }
 0x238   :  { %v714_v24 = vmul.f32 %v794_v54, %v708_v23  ;;  %v691_v25 = vpop.f32.mrf.mxu3 }
 0x239   :  { %v692_v26 = vadd.f32 %v691_v25, %v663_v4 }
 0x23a   :  { %v728_v27 = vadd.f32 %v724_v39, %v714_v24 }
 0x23b   :  { %vm697_vm3 = vcmp.gt.f32.partialorder %v692_v26, 0.0  ;;  %v701_v59 = vmul.f32 0.2, %v692_v26 }
 0x23c   :  { %732 = vst [vmem:[#allocation14 + $0x10] sm:$0xff] %v728_v27 }
 0x23d   :  { %v705_v30 = vsel %vm697_vm3, %v692_v26, %v701_v59 }
 0x23e   :  { %v709_v31 = vadd.f32 %v705_v30, %v404_v29 }
 0x240   :  { %v715_v33 = vmul.f32 %v794_v54, %v709_v31 }
 0x242   :  { %v729_v61 = vadd.f32 %v725_v32, %v715_v33 }
 0x244   :  { %733 = vst [vmem:[#allocation14 + $0x18] sm:$0xff] %v729_v61 }
 0x245   :  { %746 = dma.vmem_to_hbm [thread:$0]  %s739_s13, 512, %s741_s15, [#allocation4], %s1001_s9, %s1001_s9, %s1002_s10  }
 0x246   :  { %998 = dma.done.wait [#allocation4], 512  }
 0x247   :  { %999 = vsyncadd [#allocation4], 4294966784 }
 0x248   :  { %751 = vsyncpa [#allocation3], 1 }
 0x249   :  { %752 = vsyncpa [#allocation6], 1 }
 0x24a   :  { %753 = vsyncpa [#allocation9], 1 }
 0x24b   :  { %754 = vsyncpa [#allocation12], 1 }
 0x24c   :  { %755 = vsyncpa [#allocation4], 1 }

</bundles_post_ra>
